<compile_context>
chip_gen: v5e
topology: v5e:2x2
jax: 0.10.0
libtpu: 0.0.40
codegen_flags: <defaults>
</compile_context>

<pallas_src>
import jax
import jax.numpy as jnp
from jax.experimental import pallas as pl
from jax.experimental.pallas import tpu as pltpu


def aux_classifier_kernel(x_ref,    # (TM, C_pad)  bf16  pooled activations (batch tile)
                          cw_ref,   # (C_pad, 128) bf16  conv1 1x1 weight (transposed, K-padded)
                          cb_ref,   # (1, 128)     f32   conv1 bias
                          w1_ref,   # (128, 1024)  bf16  fc1 weight (transposed)
                          b1_ref,   # (1, 1024)    f32   fc1 bias
                          w2_ref,   # (1024, NP)   bf16  fc2 weight (transposed, lane-padded)
                          b2_ref,   # (1, NP)      f32   fc2 bias (lane-padded)
                          out_ref): # (TM, NP)     f32
    # conv1 (1x1) on the pooled map == plain matmul; f32 accumulate, ReLU.
    h = jnp.dot(x_ref[...], cw_ref[...],
                preferred_element_type=jnp.float32) + cb_ref[...]
    h = jnp.maximum(h, 0.0).astype(jnp.bfloat16)

    # flatten(1) is a no-op (pooled spatial is 1x1 -> 128 features).
    # fc1 -> dropout (identity in eval mode) -> ReLU
    h = jnp.dot(h, w1_ref[...],
                preferred_element_type=jnp.float32) + b1_ref[...]
    h = jnp.maximum(h, 0.0).astype(jnp.bfloat16)

    # fc2 (lane-padded to NP for unmasked dense stores)
    out = jnp.dot(h, w2_ref[...],
                  preferred_element_type=jnp.float32) + b2_ref[...]
    out_ref[...] = out.astype(out_ref.dtype)


def prepare_params(params):
    """One-time weight prep (transpose / pad / bf16 cast) hoisted out of the
    per-call forward path."""
    conv_w, conv_b, fc1_w, fc1_b, fc2_w, fc2_b = params
    C = conv_w.shape[1]
    classes = fc2_w.shape[0]

    c_pad = max(128, ((C + 127) // 128) * 128)          # K aligned to 128 lanes
    np_ = max(128, ((classes + 127) // 128) * 128)      # lane-dense output width

    cw = jnp.zeros((c_pad, 128), jnp.bfloat16).at[:C, :].set(
        conv_w.reshape(128, C).T.astype(jnp.bfloat16))            # (C_pad, 128)
    cb = conv_b.reshape(1, 128).astype(jnp.float32)

    w1_t = fc1_w.T.astype(jnp.bfloat16)                            # (128, 1024)
    b1 = fc1_b.reshape(1, 1024).astype(jnp.float32)

    w2_t = jnp.zeros((1024, np_), jnp.bfloat16).at[:, :classes].set(
        fc2_w.T.astype(jnp.bfloat16))                              # (1024, NP)
    b2 = jnp.zeros((1, np_), jnp.float32).at[0, :classes].set(
        fc2_b.astype(jnp.float32))

    return {"cw": cw, "cb": cb, "w1": w1_t, "b1": b1, "w2": w2_t, "b2": b2,
            "C": C, "classes": classes, "c_pad": c_pad, "np_": np_}


def _pick_tm(B):
    """Sublane-aligned batch tile: cap at 256 (v6e/v7x MXU rows), and prefer
    >= 2 grid tiles when the batch allows it so v7x's 2 TensorCores both get
    work under dimension_semantics=('parallel',)."""
    b_pad8 = ((B + 7) // 8) * 8
    if b_pad8 <= 8:
        return 8
    tm = min(256, ((b_pad8 // 2 + 7) // 8) * 8)
    return max(8, tm)


def auxiliary_classifier(x_nchw, prepped, *, tm=None):
    """x_nchw: (B, C, H, W) float32. prepped: output of prepare_params.
    Returns (B, classes) float32."""
    B, C, H, W = x_nchw.shape
    kH = kW = 5
    sH = sW = 3
    Ho = (H - kH) // sH + 1
    Wo = (W - kW) // sW + 1
    # fc1(in_features=128) requires the pooled map to be 1x1.
    assert Ho == 1 and Wo == 1, "AuxiliaryClassifier requires pooled spatial size 1x1"
    assert C == prepped["C"]

    c_pad = prepped["c_pad"]
    np_ = prepped["np_"]
    classes = prepped["classes"]

    # ---- AvgPool2d(5, stride=3): single window at (0,0). Do it in the wrapper
    # in f32 (accurate 1/25 scale), then cast to bf16 BEFORE any padding copy.
    pooled = jnp.mean(x_nchw[:, :, :kH, :kW], axis=(2, 3)).astype(jnp.bfloat16)  # (B, C)

    # ---- batch tiling
    if tm is None:
        tm = _pick_tm(B)
    tm = max(8, ((tm + 7) // 8) * 8)
    b_pad = ((B + tm - 1) // tm) * tm
    grid = (b_pad // tm,)

    # ---- zero-pad batch rows and K (channel) lanes (bf16, so this copy is cheap).
    pooled = jnp.pad(pooled, ((0, b_pad - B), (0, c_pad - C)))

    out = pl.pallas_call(
        aux_classifier_kernel,
        out_shape=jax.ShapeDtypeStruct((b_pad, np_), jnp.float32),
        grid=grid,
        in_specs=[
            pl.BlockSpec((tm, c_pad), lambda i: (i, 0)),      # activations: tiled over B
            pl.BlockSpec((c_pad, 128), lambda i: (0, 0)),     # weights: VMEM-resident
            pl.BlockSpec((1, 128), lambda i: (0, 0)),
            pl.BlockSpec((128, 1024), lambda i: (0, 0)),
            pl.BlockSpec((1, 1024), lambda i: (0, 0)),
            pl.BlockSpec((1024, np_), lambda i: (0, 0)),
            pl.BlockSpec((1, np_), lambda i: (0, 0)),
        ],
        out_specs=pl.BlockSpec((tm, np_), lambda i: (i, 0)),  # lane-dense stores
        compiler_params=pltpu.CompilerParams(
            dimension_semantics=("parallel",)),               # shard B tiles across TCs
    )(pooled, prepped["cw"], prepped["cb"], prepped["w1"], prepped["b1"],
      prepped["w2"], prepped["b2"])

    # Padded batch rows / class lanes are garbage by construction; slice them off.
    return out[:B, :classes]


def init_params(key, in_channels, classes):
    k = jax.random.split(key, 6)
    conv_w = 0.05 * jax.random.normal(k[0], (128, in_channels, 1, 1), jnp.float32)
    conv_b = 0.05 * jax.random.normal(k[1], (128,), jnp.float32)
    fc1_w = 0.05 * jax.random.normal(k[2], (1024, 128), jnp.float32)
    fc1_b = 0.05 * jax.random.normal(k[3], (1024,), jnp.float32)
    fc2_w = 0.05 * jax.random.normal(k[4], (classes, 1024), jnp.float32)
    fc2_b = 0.05 * jax.random.normal(k[5], (classes,), jnp.float32)
    return conv_w, conv_b, fc1_w, fc1_b, fc2_w, fc2_b


def reference_forward(x_nchw, params):
    """Pure-JAX f32 reference matching the PyTorch module in eval mode."""
    conv_w, conv_b, fc1_w, fc1_b, fc2_w, fc2_b = params
    B, C, H, W = x_nchw.shape
    # AvgPool2d(k=5, s=3) -> single 1x1 output window at (0, 0).
    pooled = jnp.mean(x_nchw[:, :, :5, :5], axis=(2, 3))          # (B, C)
    h = pooled @ conv_w.reshape(128, C).T + conv_b                # conv1 1x1
    h = jnp.maximum(h, 0.0)
    h = h @ fc1_w.T + fc1_b                                       # fc1 (+dropout=id)
    h = jnp.maximum(h, 0.0)
    return h @ fc2_w.T + fc2_b                                    # fc2


if __name__ == "__main__":
    key = jax.random.PRNGKey(0)
    kx, kp = jax.random.split(key)

    B, C, H, W = 2, 4, 7, 7     # (7-5)//3 + 1 == 1 -> pooled map is 1x1
    classes = 10

    x = jax.random.normal(kx, (B, C, H, W), jnp.float32)
    params = init_params(kp, C, classes)
    prepped = prepare_params(params)    # one-time weight prep (hoisted)

    # Small-batch path (single tile).
    out = jax.block_until_ready(auxiliary_classifier(x, prepped))
    ref = reference_forward(x, params)
    assert out.shape == (B, classes)
    assert jnp.allclose(out, ref, atol=3e-3, rtol=3e-2), \
        f"max abs err {jnp.max(jnp.abs(out - ref))}"

    # Multi-tile path: bigger batch -> tm heuristic yields >= 2 parallel tiles.
    B2 = 16
    x2 = jax.random.normal(jax.random.PRNGKey(1), (B2, C, H, W), jnp.float32)
    out2 = jax.block_until_ready(auxiliary_classifier(x2, prepped))
    ref2 = reference_forward(x2, params)
    assert out2.shape == (B2, classes)
    assert jnp.allclose(out2, ref2, atol=3e-3, rtol=3e-2), \
        f"max abs err {jnp.max(jnp.abs(out2 - ref2))}"

    print("KERNEL_OK")
</pallas_src>

<mosaic_0001>
module attributes {stable_mosaic.version = 11 : i64} {
  func.func @aux_classifier_kernel(%arg0: i32, %arg1: memref<8x128xbf16, #tpu.memory_space<vmem>>, %arg2: memref<128x128xbf16, #tpu.memory_space<vmem>>, %arg3: memref<1x128xf32, #tpu.memory_space<vmem>>, %arg4: memref<128x1024xbf16, #tpu.memory_space<vmem>>, %arg5: memref<1x1024xf32, #tpu.memory_space<vmem>>, %arg6: memref<1024x128xbf16, #tpu.memory_space<vmem>>, %arg7: memref<1x128xf32, #tpu.memory_space<vmem>>, %arg8: memref<8x128xf32, #tpu.memory_space<vmem>>) attributes {dimension_semantics = [#tpu.dimension_semantics<parallel>], iteration_bounds = array<i64: 1>, scalar_prefetch = 0 : i64, scratch_operands = 0 : i64, tpu.core_type = #tpu.core_type<tc>, window_params = [{transform_indices = @transform_0, window_bounds = array<i64: 8, 128>}, {pipeline_mode = #tpu.pipeline_mode<synchronous>, transform_indices = @transform_1, window_bounds = array<i64: 128, 128>}, {pipeline_mode = #tpu.pipeline_mode<synchronous>, transform_indices = @transform_2, window_bounds = array<i64: 1, 128>}, {pipeline_mode = #tpu.pipeline_mode<synchronous>, transform_indices = @transform_3, window_bounds = array<i64: 128, 1024>}, {pipeline_mode = #tpu.pipeline_mode<synchronous>, transform_indices = @transform_4, window_bounds = array<i64: 1, 1024>}, {pipeline_mode = #tpu.pipeline_mode<synchronous>, transform_indices = @transform_5, window_bounds = array<i64: 1024, 128>}, {pipeline_mode = #tpu.pipeline_mode<synchronous>, transform_indices = @transform_6, window_bounds = array<i64: 1, 128>}, {transform_indices = @transform_7, window_bounds = array<i64: 8, 128>}]} {
    %c0 = arith.constant 0 : index
    %c0_0 = arith.constant 0 : index
    %0 = vector.load %arg1[%c0, %c0_0] : memref<8x128xbf16, #tpu.memory_space<vmem>>, vector<8x128xbf16>
    %c0_1 = arith.constant 0 : index
    %c0_2 = arith.constant 0 : index
    %1 = vector.load %arg2[%c0_1, %c0_2] : memref<128x128xbf16, #tpu.memory_space<vmem>>, vector<128x128xbf16>
    %cst = arith.constant dense<0.000000e+00> : vector<8x128xf32>
    %2 = tpu.matmul %0, %1, %cst {dimension_numbers = #tpu.dot_dimension_numbers<[1], [0], [0], [1], [0, 0, 1, 1], [], []>} : vector<8x128xbf16>, vector<128x128xbf16>, vector<8x128xf32> -> vector<8x128xf32>
    %c0_3 = arith.constant 0 : index
    %c0_4 = arith.constant 0 : index
    %3 = vector.load %arg3[%c0_3, %c0_4] : memref<1x128xf32, #tpu.memory_space<vmem>>, vector<1x128xf32>
    %4 = vector.broadcast %3 : vector<1x128xf32> to vector<8x128xf32>
    %5 = arith.addf %2, %4 : vector<8x128xf32>
    %cst_5 = arith.constant 0.000000e+00 : f32
    %6 = vector.broadcast %cst_5 : f32 to vector<8x128xf32>
    %7 = arith.maximumf %5, %6 : vector<8x128xf32>
    %8 = arith.truncf %7 : vector<8x128xf32> to vector<8x128xbf16>
    %c0_6 = arith.constant 0 : index
    %c0_7 = arith.constant 0 : index
    %9 = vector.load %arg4[%c0_6, %c0_7] : memref<128x1024xbf16, #tpu.memory_space<vmem>>, vector<128x1024xbf16>
    %cst_8 = arith.constant dense<0.000000e+00> : vector<8x1024xf32>
    %10 = tpu.matmul %8, %9, %cst_8 {dimension_numbers = #tpu.dot_dimension_numbers<[1], [0], [0], [1], [0, 0, 1, 1], [], []>} : vector<8x128xbf16>, vector<128x1024xbf16>, vector<8x1024xf32> -> vector<8x1024xf32>
    %c0_9 = arith.constant 0 : index
    %c0_10 = arith.constant 0 : index
    %11 = vector.load %arg5[%c0_9, %c0_10] : memref<1x1024xf32, #tpu.memory_space<vmem>>, vector<1x1024xf32>
    %12 = vector.broadcast %11 : vector<1x1024xf32> to vector<8x1024xf32>
    %13 = arith.addf %10, %12 : vector<8x1024xf32>
    %cst_11 = arith.constant 0.000000e+00 : f32
    %14 = vector.broadcast %cst_11 : f32 to vector<8x1024xf32>
    %15 = arith.maximumf %13, %14 : vector<8x1024xf32>
    %16 = arith.truncf %15 : vector<8x1024xf32> to vector<8x1024xbf16>
    %c0_12 = arith.constant 0 : index
    %c0_13 = arith.constant 0 : index
    %17 = vector.load %arg6[%c0_12, %c0_13] : memref<1024x128xbf16, #tpu.memory_space<vmem>>, vector<1024x128xbf16>
    %cst_14 = arith.constant dense<0.000000e+00> : vector<8x128xf32>
    %18 = tpu.matmul %16, %17, %cst_14 {dimension_numbers = #tpu.dot_dimension_numbers<[1], [0], [0], [1], [0, 0, 1, 1], [], []>} : vector<8x1024xbf16>, vector<1024x128xbf16>, vector<8x128xf32> -> vector<8x128xf32>
    %c0_15 = arith.constant 0 : index
    %c0_16 = arith.constant 0 : index
    %19 = vector.load %arg7[%c0_15, %c0_16] : memref<1x128xf32, #tpu.memory_space<vmem>>, vector<1x128xf32>
    %20 = vector.broadcast %19 : vector<1x128xf32> to vector<8x128xf32>
    %21 = arith.addf %18, %20 : vector<8x128xf32>
    %c0_17 = arith.constant 0 : index
    %c0_18 = arith.constant 0 : index
    %22 = vector.load %arg8[%c0_17, %c0_18] : memref<8x128xf32, #tpu.memory_space<vmem>>, vector<8x128xf32>
    tpu.vector_store %arg8[%c0_17, %c0_18], %21 {strides = array<i32>} : memref<8x128xf32, #tpu.memory_space<vmem>>, vector<8x128xf32>,
    return
  }
  func.func @transform_0(%arg0: i32) -> (i32, i32) {
    %c0_i32 = arith.constant 0 : i32
    %c0_i32_0 = arith.constant 0 : i32
    return %arg0, %c0_i32 : i32, i32
  }
  func.func @transform_1(%arg0: i32) -> (i32, i32) {
    %c0_i32 = arith.constant 0 : i32
    %c0_i32_0 = arith.constant 0 : i32
    %c0_i32_1 = arith.constant 0 : i32
    return %c0_i32, %c0_i32_0 : i32, i32
  }
  func.func @transform_2(%arg0: i32) -> (i32, i32) {
    %c0_i32 = arith.constant 0 : i32
    %c0_i32_0 = arith.constant 0 : i32
    %c0_i32_1 = arith.constant 0 : i32
    return %c0_i32, %c0_i32_0 : i32, i32
  }
  func.func @transform_3(%arg0: i32) -> (i32, i32) {
    %c0_i32 = arith.constant 0 : i32
    %c0_i32_0 = arith.constant 0 : i32
    %c0_i32_1 = arith.constant 0 : i32
    return %c0_i32, %c0_i32_0 : i32, i32
  }
  func.func @transform_4(%arg0: i32) -> (i32, i32) {
    %c0_i32 = arith.constant 0 : i32
    %c0_i32_0 = arith.constant 0 : i32
    %c0_i32_1 = arith.constant 0 : i32
    return %c0_i32, %c0_i32_0 : i32, i32
  }
  func.func @transform_5(%arg0: i32) -> (i32, i32) {
    %c0_i32 = arith.constant 0 : i32
    %c0_i32_0 = arith.constant 0 : i32
    %c0_i32_1 = arith.constant 0 : i32
    return %c0_i32, %c0_i32_0 : i32, i32
  }
  func.func @transform_6(%arg0: i32) -> (i32, i32) {
    %c0_i32 = arith.constant 0 : i32
    %c0_i32_0 = arith.constant 0 : i32
    %c0_i32_1 = arith.constant 0 : i32
    return %c0_i32, %c0_i32_0 : i32, i32
  }
  func.func @transform_7(%arg0: i32) -> (i32, i32) {
    %c0_i32 = arith.constant 0 : i32
    %c0_i32_0 = arith.constant 0 : i32
    return %arg0, %c0_i32 : i32, i32
  }
}

</mosaic_0001>

<bundles_post_ra>
// kernel: tpu_custom_call.1
= control target key start
LH: loop header
LB: loop body
LE: loop exit
PB: predicated region body
PF: predicated region fallthrough
CT: control target
= control target key end

     0   :  { %12 = vsyncpa [#allocation3], 0  ;;  %s2271_s0 = inlined_call_operand.hbm [shape: bf16[8,128], index: 0, kind: input, shape index: {}]   ;;  %s2272_s1 = inlined_call_operand.hbm [shape: bf16[128,128], index: 1, kind: input, shape index: {}]   ;;  %s2273_s2 = inlined_call_operand.vmem [shape: f32[1,128], index: 2, kind: input, shape index: {}]   ;;  %s2274_s3 = inlined_call_operand.hbm [shape: bf16[128,1024], index: 3, kind: input, shape index: {}]   ;;  %s2275_s4 = inlined_call_operand.hbm [shape: f32[1,1024], index: 4, kind: input, shape index: {}]   ;;  %s2276_s5 = inlined_call_operand.hbm [shape: bf16[1024,128], index: 5, kind: input, shape index: {}]   ;;  %s2277_s6 = inlined_call_operand.vmem [shape: f32[1,128], index: 6, kind: input, shape index: {}]   ;;  %s2278_s7 = inlined_call_operand.hbm [shape: f32[8,128], index: 7, kind: output, shape index: {}]  }
   0x1   :  { %13 = vsyncpa [#allocation6], 0 }
   0x2   :  { %14 = vsyncpa [#allocation9], 0  ;;  %s31_s26 = sshll.u32 %s2272_s1, 4  ;;  %s32_s26 = int_to_ptr.hbm [resolvable:$true] %s31_s26 }
   0x3   :  { %15 = vsyncpa [#allocation4], 0  ;;  %s2191_s27 = smov [#allocation5]   ;;  %s60_s8 = sshll.u32 %s2275_s4, 4  ;;  %s61_s8 = int_to_ptr.hbm [resolvable:$true] %s60_s8 }
   0x4   :  { %s33_s28 = sshll.u32 %s2191_s27, 4  ;;  %s2192_s9 = smov 64   ;;  %s34_s28 = int_to_ptr.vmem [resolvable:$true] %s33_s28 }
   0x5   :  { %s2193_s10 = smov 4   ;;  %s2194_s11 = smov [#allocation8]  }
   0x6   :  { %39 = dma.hbm_to_vmem [thread:$0]  %s32_s26, 1024, %s34_s28, [#allocation6], %s2192_s9, %s2192_s9, %s2193_s10  }
   0x7   :  { %s62_s12 = sshll.u32 %s2194_s11, 4  ;;  %s21_s14 = sshll.u32 %s2271_s0, 4  ;;  %s63_s12 = int_to_ptr.vmem [resolvable:$true] %s62_s12  ;;  %s22_s14 = int_to_ptr.hbm [resolvable:$true] %s21_s14 }
   0x8   :  { %65 = dma.hbm_to_vmem [thread:$0]  %s61_s8, 128, %s63_s12, [#allocation9]  }
   0x9   :  { %s46_s4 = sshll.u32 %s2274_s3, 4  ;;  %s2195_s17 = smov [#allocation2]   ;;  %s47_s4 = int_to_ptr.hbm [resolvable:$true] %s46_s4 }
   0xa   :  { %s23_s18 = sshll.u32 %s2195_s17, 4  ;;  %s2196_s19 = smov [#allocation7]   ;;  %s24_s18 = int_to_ptr.vmem [resolvable:$true] %s23_s18 }
   0xb   :  { %26 = dma.hbm_to_vmem [thread:$0]  %s22_s14, 64, %s24_s18, [#allocation3]  }
   0xc   :  { %s48_s20 = sshll.u32 %s2196_s19, 4  ;;  %s2197_s21 = smov 512   ;;  %s49_s20 = int_to_ptr.vmem [resolvable:$true] %s48_s20 }
   0xd   :  { %s2198_s22 = smov 32   ;;  %s70_s24 = sshll.u32 %s2276_s5, 4  ;;  %s71_s24 = int_to_ptr.hbm [resolvable:$true] %s70_s24 }
   0xe   :  { %54 = dma.hbm_to_vmem [thread:$0]  %s47_s4, 8192, %s49_s20, [#allocation6], %s2197_s21, %s2197_s21, %s2198_s22  }
   0xf   :  { %s2199_s25 = smov [#allocation10]  }
  0x10   :  { %s72_s26 = sshll.u32 %s2199_s25, 4  ;;  %s73_s26 = int_to_ptr.vmem [resolvable:$true] %s72_s26 }
  0x11   :  { %78 = dma.hbm_to_vmem [thread:$0]  %s71_s24, 8192, %s73_s26, [#allocation9], %s2192_s9, %s2192_s9, %s2193_s10  }
  0x12   :  { %2183 = dma.done.wait [#allocation3], 64  }
  0x13   :  { %2184 = vsyncadd [#allocation3], 4294967232 }
  0x14   :  { %2185 = dma.done.wait [#allocation6], 9216  }
  0x15   :  { %2186 = vsyncadd [#allocation6], 4294958080 }
  0x16   :  { %2187 = dma.done.wait [#allocation9], 8320  }
  0x17   :  { %2188 = vsyncadd [#allocation9], 4294958976  ;;  %v1898_v0 = vld [vmem:[#allocation5 + $0x38] sm:$0xff]  ;;  %v1897_v1 = vld [vmem:[#allocation5 + $0x30] sm:$0xff]  ;;  %s2200_s28 = smov [#allocation11]   ;;  %s1335_s8 = sshll.u32 %s2278_s7, 4  ;;  %s1336_s8 = int_to_ptr.hbm [resolvable:$true] %s1335_s8 }
  0x18   :  { %170 = vmatpush.bf16.msra.mxu0 %v1898_v0  ;;  %v1605_v2 = vld [vmem:[#allocation7 + $0x1c0] sm:$0xf]  ;;  %v1955_v4 = vld [vmem:[#allocation7 + $0x1c4] sm:$0xf]  ;;  %v1613_v7 = vld [vmem:[#allocation7 + $0x1c8] sm:$0xf] }
  0x19   :  { %v1959_v3 = vld [vmem:[#allocation7 + $0x1dc] sm:$0xf0]  ;;  %v1607_v6 = vld [vmem:[#allocation7 + $0x1e0] sm:$0xf0]  ;;  %v1960_v8 = vld [vmem:[#allocation7 + $0x1e4] sm:$0xf0] }
  0x1a   :  { %v1606_v5 = vor.u32 %v1959_v3, %v1605_v2  ;;  %v1896_v9 = vld [vmem:[#allocation5 + $0x28] sm:$0xff]  ;;  %v1610_v10 = vor.u32 %v1955_v4, %v1607_v6  ;;  %v1614_v11 = vor.u32 %v1960_v8, %v1613_v7  ;;  %v1573_v12 = vld [vmem:[#allocation7 + $0x180] sm:$0xf]  ;;  %v1947_v14 = vld [vmem:[#allocation7 + $0x184] sm:$0xf]  ;;  %s1333_s29 = sshll.u32 %s2200_s28, 4  ;;  %s1334_s29 = int_to_ptr.vmem [resolvable:$true] %s1333_s29 }
  0x1b   :  { %v1951_v13 = vld [vmem:[#allocation7 + $0x19c] sm:$0xf0]  ;;  %v1575_v15 = vld [vmem:[#allocation7 + $0x1a0] sm:$0xf0]  ;;  %v1581_v18 = vld [vmem:[#allocation7 + $0x188] sm:$0xf] }
  0x1c   :  { %171 = vmatpush.bf16.msra.mxu0 %v1897_v1  ;;  %587 = vmatpush.bf16.msra.mxu1 %v1606_v5  ;;  %v1574_v16 = vor.u32 %v1951_v13, %v1573_v12  ;;  %v1578_v17 = vor.u32 %v1947_v14, %v1575_v15  ;;  %v1952_v19 = vld [vmem:[#allocation7 + $0x1a4] sm:$0xf0]  ;;  %v1541_v21 = vld [vmem:[#allocation7 + $0x140] sm:$0xf]  ;;  %v1939_v23 = vld [vmem:[#allocation7 + $0x144] sm:$0xf] }
  0x1d   :  { %600 = vmatpush.bf16.msra.mxu2 %v1610_v10  ;;  %613 = vmatpush.bf16.msra.mxu3 %v1614_v11  ;;  %v1582_v20 = vor.u32 %v1952_v19, %v1581_v18  ;;  %v1943_v22 = vld [vmem:[#allocation7 + $0x15c] sm:$0xf0]  ;;  %v1543_v24 = vld [vmem:[#allocation7 + $0x160] sm:$0xf0]  ;;  %v1549_v25 = vld [vmem:[#allocation7 + $0x148] sm:$0xf] }
  0x1e   :  { %v1895_v26 = vld [vmem:[#allocation5 + $0x20] sm:$0xff]  ;;  %v1542_v27 = vor.u32 %v1943_v22, %v1541_v21  ;;  %v1944_v28 = vld [vmem:[#allocation7 + $0x164] sm:$0xf0]  ;;  %v1546_v29 = vor.u32 %v1939_v23, %v1543_v24  ;;  %v1894_v37 = vld [vmem:[#allocation5 + $0x18] sm:$0xff] }
  0x1f   :  { %v1550_v30 = vor.u32 %v1944_v28, %v1549_v25  ;;  %v1509_v31 = vld [vmem:[#allocation7 + $0x100] sm:$0xf]  ;;  %v1931_v33 = vld [vmem:[#allocation7 + $0x104] sm:$0xf]  ;;  %v1517_v35 = vld [vmem:[#allocation7 + $0x108] sm:$0xf] }
  0x20   :  { %172 = vmatpush.bf16.msra.mxu0 %v1896_v9  ;;  %588 = vmatpush.bf16.msra.mxu1 %v1574_v16  ;;  %v1935_v32 = vld [vmem:[#allocation7 + $0x11c] sm:$0xf0]  ;;  %v1511_v34 = vld [vmem:[#allocation7 + $0x120] sm:$0xf0]  ;;  %v1936_v36 = vld [vmem:[#allocation7 + $0x124] sm:$0xf0] }
  0x21   :  { %601 = vmatpush.bf16.msra.mxu2 %v1578_v17  ;;  %614 = vmatpush.bf16.msra.mxu3 %v1582_v20  ;;  %v1510_v38 = vor.u32 %v1935_v32, %v1509_v31  ;;  %v1514_v39 = vor.u32 %v1931_v33, %v1511_v34  ;;  %v1518_v40 = vor.u32 %v1936_v36, %v1517_v35  ;;  %v1477_v41 = vld [vmem:[#allocation7 + $0xc0] sm:$0xf]  ;;  %v1923_v43 = vld [vmem:[#allocation7 + $0xc4] sm:$0xf]  ;;  %v1485_v45 = vld [vmem:[#allocation7 + $0xc8] sm:$0xf] }
  0x22   :  { %v1927_v42 = vld [vmem:[#allocation7 + $0xdc] sm:$0xf0]  ;;  %v1479_v44 = vld [vmem:[#allocation7 + $0xe0] sm:$0xf0]  ;;  %v1928_v46 = vld [vmem:[#allocation7 + $0xe4] sm:$0xf0] }
  0x23   :  { %v1893_v47 = vld [vmem:[#allocation5 + $0x10] sm:$0xff]  ;;  %v1478_v48 = vor.u32 %v1927_v42, %v1477_v41  ;;  %v1482_v49 = vor.u32 %v1923_v43, %v1479_v44  ;;  %v1486_v50 = vor.u32 %v1928_v46, %v1485_v45  ;;  %v1445_v51 = vld [vmem:[#allocation7 + $0x80] sm:$0xf]  ;;  %v1915_v53 = vld [vmem:[#allocation7 + $0x84] sm:$0xf] }
  0x24   :  { %173 = vmatpush.bf16.msra.mxu0 %v1895_v26  ;;  %589 = vmatpush.bf16.msra.mxu1 %v1542_v27  ;;  %v1919_v52 = vld [vmem:[#allocation7 + $0x9c] sm:$0xf0]  ;;  %v1447_v54 = vld [vmem:[#allocation7 + $0xa0] sm:$0xf0]  ;;  %v1453_v55 = vld [vmem:[#allocation7 + $0x88] sm:$0xf] }
  0x25   :  { %602 = vmatpush.bf16.msra.mxu2 %v1546_v29  ;;  %615 = vmatpush.bf16.msra.mxu3 %v1550_v30  ;;  %v1920_v56 = vld [vmem:[#allocation7 + $0xa4] sm:$0xf0]  ;;  %v1446_v58 = vor.u32 %v1919_v52, %v1445_v51  ;;  %v1956_v59 = vld [vmem:[#allocation7 + $0x1cc] sm:$0xf]  ;;  %v1450_v60 = vor.u32 %v1915_v53, %v1447_v54  ;;  %v1413_v62 = vld [vmem:[#allocation7 + $0x40] sm:$0xf] }
  0x26   :  { %v1892_v57 = vld [vmem:[#allocation5 + $0x8] sm:$0xff]  ;;  %v1454_v61 = vor.u32 %v1920_v56, %v1453_v55  ;;  %v1911_v63 = vld [vmem:[#allocation7 + $0x5c] sm:$0xf0]  ;;  %v1907_v1 = vld [vmem:[#allocation7 + $0x44] sm:$0xf] }
  0x27   :  { %v1615_v0 = vld [vmem:[#allocation7 + $0x1e8] sm:$0xf0]  ;;  %v1415_v2 = vld [vmem:[#allocation7 + $0x60] sm:$0xf0]  ;;  %v1421_v3 = vld [vmem:[#allocation7 + $0x48] sm:$0xf]  ;;  %v1414_v8 = vor.u32 %v1911_v63, %v1413_v62 }
  0x28   :  { %174 = vmatpush.bf16.msra.mxu0 %v1894_v37  ;;  %590 = vmatpush.bf16.msra.mxu1 %v1510_v38  ;;  %v1912_v4 = vld [vmem:[#allocation7 + $0x64] sm:$0xf0]  ;;  %v1891_v5 = vld [vmem:[#allocation5] sm:$0xff]  ;;  %v1948_v6 = vld [vmem:[#allocation7 + $0x18c] sm:$0xf]  ;;  %v1618_v9 = vor.u32 %v1956_v59, %v1615_v0  ;;  %v1418_v10 = vor.u32 %v1907_v1, %v1415_v2 }
  0x29   :  { %603 = vmatpush.bf16.msra.mxu2 %v1514_v39  ;;  %616 = vmatpush.bf16.msra.mxu3 %v1518_v40  ;;  %v1583_v7 = vld [vmem:[#allocation7 + $0x1a8] sm:$0xf0]  ;;  %v1381_v11 = vld [vmem:[#allocation7] sm:$0xf]  ;;  %v1899_v13 = vld [vmem:[#allocation7 + $0x4] sm:$0xf]  ;;  %v1422_v15 = vor.u32 %v1912_v4, %v1421_v3 }
  0x2a   :  { %v1903_v12 = vld [vmem:[#allocation7 + $0x1c] sm:$0xf0]  ;;  %v101_v14 = vld [vmem:[#allocation2] sm:$0xf]  ;;  %v1383_v16 = vld [vmem:[#allocation7 + $0x20] sm:$0xf0]  ;;  %v1586_v26 = vor.u32 %v1948_v6, %v1583_v7 }
  0x2b   :  { %v1389_v17 = vld [vmem:[#allocation7 + $0x8] sm:$0xf]  ;;  %v1621_v19 = vld [vmem:[#allocation7 + $0x1d0] sm:$0xf]  ;;  %v1957_v21 = vld [vmem:[#allocation7 + $0x1d4] sm:$0xf]  ;;  %v1382_v22 = vor.u32 %v1903_v12, %v1381_v11  ;;  %v1386_v27 = vor.u32 %v1899_v13, %v1383_v16 }
  0x2c   :  { %175 = vmatpush.bf16.msra.mxu0 %v1893_v47  ;;  %591 = vmatpush.bf16.msra.mxu1 %v1478_v48  ;;  %v1904_v18 = vld [vmem:[#allocation7 + $0x24] sm:$0xf0]  ;;  %v1961_v20 = vld [vmem:[#allocation7 + $0x1ec] sm:$0xf0]  ;;  %v1623_v23 = vld [vmem:[#allocation7 + $0x1f0] sm:$0xf0] }
  0x2d   :  { %604 = vmatpush.bf16.msra.mxu2 %v1482_v49  ;;  %617 = vmatpush.bf16.msra.mxu3 %v1486_v50  ;;  %v1629_v24 = vld [vmem:[#allocation7 + $0x1d8] sm:$0xf]  ;;  %v1940_v28 = vld [vmem:[#allocation7 + $0x14c] sm:$0xf]  ;;  %v1390_v30 = vor.u32 %v1904_v18, %v1389_v17  ;;  %v1622_v31 = vor.u32 %v1961_v20, %v1621_v19  ;;  %v1626_v32 = vor.u32 %v1957_v21, %v1623_v23  ;;  %v1589_v34 = vld [vmem:[#allocation7 + $0x190] sm:$0xf] }
  0x2e   :  { %v1962_v25 = vld [vmem:[#allocation7 + $0x1f4] sm:$0xf0]  ;;  %v1551_v29 = vld [vmem:[#allocation7 + $0x168] sm:$0xf0]  ;;  %v1953_v35 = vld [vmem:[#allocation7 + $0x1ac] sm:$0xf0] }
  0x2f   :  { %v1630_v33 = vor.u32 %v1962_v25, %v1629_v24  ;;  %v1949_v36 = vld [vmem:[#allocation7 + $0x194] sm:$0xf]  ;;  %v1597_v38 = vld [vmem:[#allocation7 + $0x198] sm:$0xf]  ;;  %v1554_v40 = vor.u32 %v1940_v28, %v1551_v29  ;;  %v1932_v41 = vld [vmem:[#allocation7 + $0x10c] sm:$0xf]  ;;  %v1590_v43 = vor.u32 %v1953_v35, %v1589_v34 }
  0x30   :  { %176 = vmatpush.bf16.msra.mxu0 %v1892_v57  ;;  %592 = vmatpush.bf16.msra.mxu1 %v1446_v58  ;;  %v1591_v37 = vld [vmem:[#allocation7 + $0x1b0] sm:$0xf0]  ;;  %v1954_v39 = vld [vmem:[#allocation7 + $0x1b4] sm:$0xf0]  ;;  %v1519_v42 = vld [vmem:[#allocation7 + $0x128] sm:$0xf0] }
  0x31   :  { %605 = vmatpush.bf16.msra.mxu2 %v1450_v60  ;;  %618 = vmatpush.bf16.msra.mxu3 %v1454_v61  ;;  %v1594_v44 = vor.u32 %v1949_v36, %v1591_v37  ;;  %v1598_v45 = vor.u32 %v1954_v39, %v1597_v38  ;;  %v1522_v46 = vor.u32 %v1932_v41, %v1519_v42  ;;  %v1924_v47 = vld [vmem:[#allocation7 + $0xcc] sm:$0xf]  ;;  %v1958_v58 = vld [vmem:[#allocation7 + $0x1dc] sm:$0xf]  ;;  %v1557_v1 = vld [vmem:[#allocation7 + $0x150] sm:$0xf] }
  0x32   :  { %v1487_v48 = vld [vmem:[#allocation7 + $0xe8] sm:$0xf0]  ;;  %v1631_v59 = vld [vmem:[#allocation7 + $0x1f8] sm:$0xf0]  ;;  %v1945_v2 = vld [vmem:[#allocation7 + $0x16c] sm:$0xf0] }
  0x33   :  { %v1490_v49 = vor.u32 %v1924_v47, %v1487_v48  ;;  %v1916_v50 = vld [vmem:[#allocation7 + $0x8c] sm:$0xf]  ;;  %v1634_v61 = vor.u32 %v1958_v58, %v1631_v59  ;;  %v1950_v62 = vld [vmem:[#allocation7 + $0x19c] sm:$0xf]  ;;  %v1941_v3 = vld [vmem:[#allocation7 + $0x154] sm:$0xf]  ;;  %v1558_v4 = vor.u32 %v1945_v2, %v1557_v1 }
  0x34   :  { %177 = vmatpush.bf16.msra.mxu0 %v1891_v5  ;;  %593 = vmatpush.bf16.msra.mxu1 %v1414_v8  ;;  %v1455_v51 = vld [vmem:[#allocation7 + $0xa8] sm:$0xf0]  ;;  %v1599_v63 = vld [vmem:[#allocation7 + $0x1b8] sm:$0xf0]  ;;  %v1559_v5 = vld [vmem:[#allocation7 + $0x170] sm:$0xf0] }
  0x35   :  { %606 = vmatpush.bf16.msra.mxu2 %v1418_v10  ;;  %619 = vmatpush.bf16.msra.mxu3 %v1422_v15  ;;  %v1458_v52 = vor.u32 %v1916_v50, %v1455_v51  ;;  %v1908_v53 = vld [vmem:[#allocation7 + $0x4c] sm:$0xf]  ;;  %v1602_v0 = vor.u32 %v1950_v62, %v1599_v63  ;;  %v1565_v6 = vld [vmem:[#allocation7 + $0x158] sm:$0xf]  ;;  %v1562_v8 = vor.u32 %v1941_v3, %v1559_v5  ;;  %v1942_v10 = vld [vmem:[#allocation7 + $0x15c] sm:$0xf] }
  0x36   :  { %v1423_v54 = vld [vmem:[#allocation7 + $0x68] sm:$0xf0]  ;;  %v1946_v7 = vld [vmem:[#allocation7 + $0x174] sm:$0xf0]  ;;  %v1567_v11 = vld [vmem:[#allocation7 + $0x178] sm:$0xf0] }
  0x37   :  { %178 = vmatmul.bf16.vlgmr.msra.gmra.mxu0 %v101_v14  ;;  %v1426_v55 = vor.u32 %v1908_v53, %v1423_v54  ;;  %v1900_v56 = vld [vmem:[#allocation7 + $0xc] sm:$0xf]  ;;  %v1570_v12 = vor.u32 %v1942_v10, %v1567_v11  ;;  %v1525_v13 = vld [vmem:[#allocation7 + $0x110] sm:$0xf]  ;;  %v1933_v15 = vld [vmem:[#allocation7 + $0x114] sm:$0xf] }
  0x38   :  { %626 = vmatpush.bf16.msrb.mxu0 %v1618_v9  ;;  %594 = vmatpush.bf16.msra.mxu1 %v1382_v22  ;;  %v1391_v57 = vld [vmem:[#allocation7 + $0x28] sm:$0xf0]  ;;  %v1566_v9 = vor.u32 %v1946_v7, %v1565_v6  ;;  %v1937_v14 = vld [vmem:[#allocation7 + $0x12c] sm:$0xf0]  ;;  %v1527_v17 = vld [vmem:[#allocation7 + $0x130] sm:$0xf0] }
  0x39   :  { %607 = vmatpush.bf16.msra.mxu2 %v1386_v27  ;;  %620 = vmatpush.bf16.msra.mxu3 %v1390_v30  ;;  %v1394_v60 = vor.u32 %v1900_v56, %v1391_v57  ;;  %v1526_v16 = vor.u32 %v1937_v14, %v1525_v13  ;;  %v1533_v18 = vld [vmem:[#allocation7 + $0x118] sm:$0xf]  ;;  %v1530_v20 = vor.u32 %v1933_v15, %v1527_v17  ;;  %v1934_v22 = vld [vmem:[#allocation7 + $0x11c] sm:$0xf]  ;;  %v1493_v25 = vld [vmem:[#allocation7 + $0xd0] sm:$0xf] }
  0x3a   :  { %v1938_v19 = vld [vmem:[#allocation7 + $0x134] sm:$0xf0]  ;;  %v1535_v23 = vld [vmem:[#allocation7 + $0x138] sm:$0xf0]  ;;  %v1925_v27 = vld [vmem:[#allocation7 + $0xd4] sm:$0xf] }
  0x3b   :  { %v1534_v21 = vor.u32 %v1938_v19, %v1533_v18  ;;  %v1538_v24 = vor.u32 %v1934_v22, %v1535_v23  ;;  %v1495_v29 = vld [vmem:[#allocation7 + $0xf0] sm:$0xf0]  ;;  %v1501_v30 = vld [vmem:[#allocation7 + $0xd8] sm:$0xf]  ;;  %v1926_v34 = vld [vmem:[#allocation7 + $0xdc] sm:$0xf] }
  0x3c   :  { %627 = vmatpush.bf16.msrb.mxu0 %v1586_v26  ;;  %639 = vmatpush.bf16.msrb.mxu1 %v1622_v31  ;;  %v1929_v26 = vld [vmem:[#allocation7 + $0xec] sm:$0xf0]  ;;  %v1930_v31 = vld [vmem:[#allocation7 + $0xf4] sm:$0xf0]  ;;  %v1503_v35 = vld [vmem:[#allocation7 + $0xf8] sm:$0xf0] }
  0x3d   :  { %652 = vmatpush.bf16.msrb.mxu2 %v1626_v32  ;;  %665 = vmatpush.bf16.msrb.mxu3 %v1630_v33  ;;  %v1494_v28 = vor.u32 %v1929_v26, %v1493_v25  ;;  %v1498_v32 = vor.u32 %v1925_v27, %v1495_v29  ;;  %v1502_v33 = vor.u32 %v1930_v31, %v1501_v30  ;;  %v1461_v36 = vld [vmem:[#allocation7 + $0x90] sm:$0xf]  ;;  %v1917_v39 = vld [vmem:[#allocation7 + $0x94] sm:$0xf]  ;;  %v1471_v47 = vld [vmem:[#allocation7 + $0xb8] sm:$0xf0] }
  0x3e   :  { %v1506_v37 = vor.u32 %v1926_v34, %v1503_v35  ;;  %v1921_v38 = vld [vmem:[#allocation7 + $0xac] sm:$0xf0]  ;;  %v1909_v51 = vld [vmem:[#allocation7 + $0x54] sm:$0xf]  ;;  %v1437_v53 = vld [vmem:[#allocation7 + $0x58] sm:$0xf] }
  0x3f   :  { %v1462_v41 = vor.u32 %v1921_v38, %v1461_v36  ;;  %v1429_v48 = vld [vmem:[#allocation7 + $0x50] sm:$0xf]  ;;  %v1910_v56 = vld [vmem:[#allocation7 + $0x5c] sm:$0xf]  ;;  %v1901_v62 = vld [vmem:[#allocation7 + $0x14] sm:$0xf] }
  0x40   :  { %628 = vmatpush.bf16.msrb.mxu0 %v1554_v40  ;;  %640 = vmatpush.bf16.msrb.mxu1 %v1590_v43  ;;  %v1463_v40 = vld [vmem:[#allocation7 + $0xb0] sm:$0xf0]  ;;  %v1469_v43 = vld [vmem:[#allocation7 + $0x98] sm:$0xf]  ;;  %v1439_v57 = vld [vmem:[#allocation7 + $0x78] sm:$0xf0] }
  0x41   :  { %653 = vmatpush.bf16.msrb.mxu2 %v1594_v44  ;;  %666 = vmatpush.bf16.msrb.mxu3 %v1598_v45  ;;  %v1466_v42 = vor.u32 %v1917_v39, %v1463_v40  ;;  %v1922_v44 = vld [vmem:[#allocation7 + $0xb4] sm:$0xf0]  ;;  %v1918_v45 = vld [vmem:[#allocation7 + $0x9c] sm:$0xf]  ;;  %v1442_v63 = vor.u32 %v1910_v56, %v1439_v57  ;;  %v1970_v14 = vld [vmem:[#allocation10 + $0x38] sm:$0xff] }
  0x42   :  { %v1474_v50 = vor.u32 %v1918_v45, %v1471_v47  ;;  %v1405_v1 = vld [vmem:[#allocation7 + $0x18] sm:$0xf]  ;;  %v1902_v3 = vld [vmem:[#allocation7 + $0x1c] sm:$0xf]  ;;  %v1994_v15 = vld [vmem:[#allocation10 + $0xf8] sm:$0xff] }
  0x43   :  { %v1906_v2 = vld [vmem:[#allocation7 + $0x34] sm:$0xf0]  ;;  %v1986_v17 = vld [vmem:[#allocation10 + $0xb8] sm:$0xff]  ;;  %v1968_v23 = vld [vmem:[#allocation10 + $0x28] sm:$0xff] }
  0x44   :  { %629 = vmatpush.bf16.msrb.mxu0 %v1522_v46  ;;  %641 = vmatpush.bf16.msrb.mxu1 %v1558_v4  ;;  %v1470_v46 = vor.u32 %v1922_v44, %v1469_v43  ;;  %v1407_v4 = vld [vmem:[#allocation7 + $0x38] sm:$0xf0]  ;;  %v1406_v7 = vor.u32 %v1906_v2, %v1405_v1  ;;  %v1976_v25 = vld [vmem:[#allocation10 + $0x68] sm:$0xff]  ;;  %v1967_v27 = vld [vmem:[#allocation10 + $0x20] sm:$0xff] }
  0x45   :  { %654 = vmatpush.bf16.msrb.mxu2 %v1562_v8  ;;  %667 = vmatpush.bf16.msrb.mxu3 %v1566_v9  ;;  %v1410_v8 = vor.u32 %v1902_v3, %v1407_v4  ;;  %v2037_v9 = vld [vmem:[%s2273_s2] ss:$0 sm:$0xff]  ;;  %v1984_v26 = vld [vmem:[#allocation10 + $0xa8] sm:$0xff]  ;;  %v1975_v29 = vld [vmem:[#allocation10 + $0x60] sm:$0xff] }
  0x46   :  { %v1969_v19 = vld [vmem:[#allocation10 + $0x30] sm:$0xff]  ;;  %v1983_v30 = vld [vmem:[#allocation10 + $0xa0] sm:$0xff]  ;;  %v1966_v31 = vld [vmem:[#allocation10 + $0x18] sm:$0xff] }
  0x47   :  { %v1985_v22 = vld [vmem:[#allocation10 + $0xb0] sm:$0xff]  ;;  %v1982_v34 = vld [vmem:[#allocation10 + $0x98] sm:$0xff]  ;;  %v1964_v39 = vld [vmem:[#allocation10 + $0x8] sm:$0xff] }
  0x48   :  { %630 = vmatpush.bf16.msrb.mxu0 %v1490_v49  ;;  %642 = vmatpush.bf16.msrb.mxu1 %v1526_v16  ;;  %v1913_v49 = vld [vmem:[#allocation7 + $0x6c] sm:$0xf0]  ;;  %v1978_v16 = vld [vmem:[#allocation10 + $0x78] sm:$0xff]  ;;  %v1965_v35 = vld [vmem:[#allocation10 + $0x10] sm:$0xff] }
  0x49   :  { %655 = vmatpush.bf16.msrb.mxu2 %v1530_v20  ;;  %668 = vmatpush.bf16.msrb.mxu3 %v1534_v21  ;;  %v1430_v54 = vor.u32 %v1913_v49, %v1429_v48  ;;  %v1993_v20 = vld [vmem:[#allocation10 + $0xf0] sm:$0xff]  ;;  %v1988_v40 = vld [vmem:[#allocation10 + $0xc8] sm:$0xff]  ;;  %v1963_v43 = vld [vmem:[#allocation10] sm:$0xff] }
  0x4a   :  { %v1977_v21 = vld [vmem:[#allocation10 + $0x70] sm:$0xff]  ;;  %v1987_v44 = vld [vmem:[#allocation10 + $0xc0] sm:$0xff]  ;;  %v2002_v45 = vld [vmem:[#allocation10 + $0x138] sm:$0xff] }
  0x4b   :  { %v1989_v36 = vld [vmem:[#allocation10 + $0xd0] sm:$0xff]  ;;  %v1971_v47 = vld [vmem:[#allocation10 + $0x40] sm:$0xff]  ;;  %v2010_v49 = vld [vmem:[#allocation10 + $0x178] sm:$0xff] }
  0x4c   :  { %631 = vmatpush.bf16.msrb.mxu0 %v1458_v52  ;;  %643 = vmatpush.bf16.msrb.mxu1 %v1494_v28  ;;  %v1431_v52 = vld [vmem:[#allocation7 + $0x70] sm:$0xf0]  ;;  %v1991_v28 = vld [vmem:[#allocation10 + $0xe0] sm:$0xff]  ;;  %v1981_v38 = vld [vmem:[#allocation10 + $0x90] sm:$0xff] }
  0x4d   :  { %656 = vmatpush.bf16.msrb.mxu2 %v1498_v32  ;;  %669 = vmatpush.bf16.msrb.mxu3 %v1502_v33  ;;  %v1434_v58 = vor.u32 %v1909_v51, %v1431_v52  ;;  %v1990_v32 = vld [vmem:[#allocation10 + $0xd8] sm:$0xff]  ;;  %v1979_v48 = vld [vmem:[#allocation10 + $0x80] sm:$0xff]  ;;  %v2001_v51 = vld [vmem:[#allocation10 + $0x130] sm:$0xff] }
  0x4e   :  { %v1974_v33 = vld [vmem:[#allocation10 + $0x58] sm:$0xff]  ;;  %v2025_v52 = vld [vmem:[#allocation10 + $0x1f0] sm:$0xff]  ;;  %v1999_v57 = vld [vmem:[#allocation10 + $0x120] sm:$0xff] }
  0x4f   :  { %v2017_v56 = vld [vmem:[#allocation10 + $0x1b0] sm:$0xff]  ;;  %v2006_v3 = vld [vmem:[#allocation10 + $0x158] sm:$0xff] }
  0x50   :  { %632 = vmatpush.bf16.msrb.mxu0 %v1426_v55  ;;  %644 = vmatpush.bf16.msrb.mxu1 %v1462_v41  ;;  %v1914_v55 = vld [vmem:[#allocation7 + $0x74] sm:$0xf0]  ;;  %v1972_v41 = vld [vmem:[#allocation10 + $0x48] sm:$0xff]  ;;  %v2014_v4 = vld [vmem:[#allocation10 + $0x198] sm:$0xff] }
  0x51   :  { %657 = vmatpush.bf16.msrb.mxu2 %v1466_v42  ;;  %670 = vmatpush.bf16.msrb.mxu3 %v1470_v46  ;;  %v1438_v59 = vor.u32 %v1914_v55, %v1437_v53  ;;  %v1980_v42 = vld [vmem:[#allocation10 + $0x88] sm:$0xff]  ;;  %v2026_v46 = vld [vmem:[#allocation10 + $0x1f8] sm:$0xff]  ;;  %v2009_v55 = vld [vmem:[#allocation10 + $0x170] sm:$0xff] }
  0x52   :  { %v2000_v53 = vld [vmem:[#allocation10 + $0x128] sm:$0xff]  ;;  %v1997_v1 = vld [vmem:[#allocation10 + $0x110] sm:$0xff] }
  0x53   :  { %v2021_v2 = vld [vmem:[#allocation10 + $0x1d0] sm:$0xff] }
  0x54   :  { %633 = vmatpush.bf16.msrb.mxu0 %v1394_v60  ;;  %v1397_v60 = vld [vmem:[#allocation7 + $0x10] sm:$0xf]  ;;  %645 = vmatpush.bf16.msrb.mxu1 %v1430_v54 }
  0x55   :  { %658 = vmatpush.bf16.msrb.mxu2 %v1434_v58  ;;  %671 = vmatpush.bf16.msrb.mxu3 %v1438_v59  ;;  %v2024_v54 = vld [vmem:[#allocation10 + $0x1e8] sm:$0xff]  ;;  %v2023_v58 = vld [vmem:[#allocation10 + $0x1e0] sm:$0xff] }
  0x56   :  { %v2008_v59 = vld [vmem:[#allocation10 + $0x168] sm:$0xff] }
  0x58   :  { %678 = vmatpush.bf16.msra.mxu0 %v1634_v61  ;;  %v1905_v61 = vld [vmem:[#allocation7 + $0x2c] sm:$0xf0] }
  0x59   :  { %v1398_v5 = vor.u32 %v1905_v61, %v1397_v60  ;;  %672 = vmatpush.bf16.msrb.mxu3 %v1406_v7  ;;  %v2016_v60 = vld [vmem:[#allocation10 + $0x1a8] sm:$0xff]  ;;  %v1998_v61 = vld [vmem:[#allocation10 + $0x118] sm:$0xff]  ;;  %v2005_v7 = vld [vmem:[#allocation10 + $0x150] sm:$0xff] }
  0x5b   :  { %646 = vmatpush.bf16.msrb.mxu1 %v1398_v5  ;;  %v1996_v5 = vld [vmem:[#allocation10 + $0x108] sm:$0xff] }
  0x5c   :  { %679 = vmatpush.bf16.msra.mxu0 %v1602_v0  ;;  %v1399_v0 = vld [vmem:[#allocation7 + $0x30] sm:$0xf0] }
  0x5d   :  { %v1402_v6 = vor.u32 %v1901_v62, %v1399_v0  ;;  %v2022_v62 = vld [vmem:[#allocation10 + $0x1d8] sm:$0xff]  ;;  %v2015_v0 = vld [vmem:[#allocation10 + $0x1a0] sm:$0xff] }
  0x5f   :  { %659 = vmatpush.bf16.msrb.mxu2 %v1402_v6  ;;  %v2020_v6 = vld [vmem:[#allocation10 + $0x1c8] sm:$0xff] }
  0x60   :  { %680 = vmatpush.bf16.msra.mxu0 %v1570_v12 }
  0x64   :  { %681 = vmatpush.bf16.msra.mxu0 %v1538_v24  ;;  %v1992_v24 = vld [vmem:[#allocation10 + $0xe8] sm:$0xff] }
  0x68   :  { %682 = vmatpush.bf16.msra.mxu0 %v1506_v37  ;;  %v1973_v37 = vld [vmem:[#allocation10 + $0x50] sm:$0xff] }
  0x6c   :  { %683 = vmatpush.bf16.msra.mxu0 %v1474_v50  ;;  %v2018_v50 = vld [vmem:[#allocation10 + $0x1b8] sm:$0xff] }
  0x70   :  { %684 = vmatpush.bf16.msra.mxu0 %v1442_v63  ;;  %v2007_v63 = vld [vmem:[#allocation10 + $0x160] sm:$0xff] }
  0x74   :  { %685 = vmatpush.bf16.msra.mxu0 %v1410_v8  ;;  %v2013_v8 = vld [vmem:[#allocation10 + $0x190] sm:$0xff] }
  0xb4   :  { %v179_v10 = vpop.f32.mrf.mxu0 }
  0xb5   :  { %v180_v11 = vadd.f32 %v2037_v9, %v179_v10  ;;  %v1995_v9 = vld [vmem:[#allocation10 + $0x100] sm:$0xff] }
  0xb6   :  { %v2019_v10 = vld [vmem:[#allocation10 + $0x1c0] sm:$0xff] }
  0xb7   :  { %v183_v12 = vmax.f32 %v180_v11, 0.0  ;;  %v2004_v11 = vld [vmem:[#allocation10 + $0x148] sm:$0xff] }
  0xb9   :  { %v184_v13 = vpack.c.bf16 %v183_v12, %v183_v12  ;;  %v2012_v12 = vld [vmem:[#allocation10 + $0x188] sm:$0xff] }
  0xbb   :  { %595 = vmatmul.bf16.vlgmr.msra.gmra.mxu1 %v184_v13  ;;  %608 = vmatmul.bf16.vlgmr.msra.gmra.mxu2 %v184_v13 }
  0xbc   :  { %621 = vmatmul.bf16.vlgmr.msra.gmra.mxu3 %v184_v13  ;;  %634 = vmatmul.bf16.vlgmr.msrb.gmra.mxu0 %v184_v13  ;;  %v181_v18 = vpop.f32.mrf.mxu0 }
  0xbd   :  { %1223 = vmatpush.bf16.msra.mxu1 %v1970_v14  ;;  %1262 = vmatpush.bf16.msrb.mxu0 %v1994_v15  ;;  %v2011_v14 = vld [vmem:[#allocation10 + $0x180] sm:$0xff]  ;;  %v249_v15 = vld [vmem:[#allocation8] sm:$0xff] }
  0xbe   :  { %1236 = vmatpush.bf16.msra.mxu2 %v1978_v16  ;;  %1249 = vmatpush.bf16.msra.mxu3 %v1986_v17  ;;  %v251_v16 = vperm.slane %v249_v15, 0  ;;  %v254_v17 = vperm.slane %v249_v15, 3 }
  0xc1   :  { %1224 = vmatpush.bf16.msra.mxu1 %v1969_v19  ;;  %1263 = vmatpush.bf16.msrb.mxu0 %v1993_v20 }
  0xc2   :  { %1237 = vmatpush.bf16.msra.mxu2 %v1977_v21  ;;  %1250 = vmatpush.bf16.msra.mxu3 %v1985_v22 }
  0xc5   :  { %1225 = vmatpush.bf16.msra.mxu1 %v1968_v23  ;;  %1264 = vmatpush.bf16.msrb.mxu0 %v1992_v24  ;;  %v252_v23 = vperm.slane %v249_v15, 1 }
  0xc6   :  { %1238 = vmatpush.bf16.msra.mxu2 %v1976_v25  ;;  %1251 = vmatpush.bf16.msra.mxu3 %v1984_v26  ;;  %v253_v25 = vperm.slane %v249_v15, 2 }
  0xc9   :  { %1226 = vmatpush.bf16.msra.mxu1 %v1967_v27  ;;  %1265 = vmatpush.bf16.msrb.mxu0 %v1991_v28 }
  0xca   :  { %1239 = vmatpush.bf16.msra.mxu2 %v1975_v29  ;;  %1252 = vmatpush.bf16.msra.mxu3 %v1983_v30 }
  0xcb   :  { %647 = vmatmul.bf16.vlgmr.msrb.gmra.mxu1 %v184_v13  ;;  %660 = vmatmul.bf16.vlgmr.msrb.gmra.mxu2 %v184_v13 }
  0xcc   :  { %673 = vmatmul.bf16.vlgmr.msrb.gmra.mxu3 %v184_v13  ;;  %686 = vmatmul.bf16.vlgmr.msra.gmra.mxu0 %v184_v13  ;;  %v2003_v13 = vld [vmem:[#allocation10 + $0x140] sm:$0xff] }
  0xcd   :  { %1227 = vmatpush.bf16.msra.mxu1 %v1966_v31  ;;  %1266 = vmatpush.bf16.msrb.mxu0 %v1990_v32 }
  0xce   :  { %1240 = vmatpush.bf16.msra.mxu2 %v1974_v33  ;;  %1253 = vmatpush.bf16.msra.mxu3 %v1982_v34 }
  0xd1   :  { %1228 = vmatpush.bf16.msra.mxu1 %v1965_v35  ;;  %1267 = vmatpush.bf16.msrb.mxu0 %v1989_v36 }
  0xd2   :  { %1241 = vmatpush.bf16.msra.mxu2 %v1973_v37  ;;  %1254 = vmatpush.bf16.msra.mxu3 %v1981_v38  ;;  %v255_v38 = vperm.slane %v249_v15, 4 }
  0xd5   :  { %1229 = vmatpush.bf16.msra.mxu1 %v1964_v39  ;;  %1268 = vmatpush.bf16.msrb.mxu0 %v1988_v40  ;;  %v258_v40 = vperm.slane %v249_v15, 7 }
  0xd6   :  { %1242 = vmatpush.bf16.msra.mxu2 %v1972_v41  ;;  %1255 = vmatpush.bf16.msra.mxu3 %v1980_v42 }
  0xd9   :  { %1230 = vmatpush.bf16.msra.mxu1 %v1963_v43  ;;  %1269 = vmatpush.bf16.msrb.mxu0 %v1987_v44 }
  0xda   :  { %1243 = vmatpush.bf16.msra.mxu2 %v1971_v47  ;;  %1256 = vmatpush.bf16.msra.mxu3 %v1979_v48  ;;  %v256_v47 = vperm.slane %v249_v15, 5 }
  0xdd   :  { %1275 = vmatpush.bf16.msrb.mxu1 %v2002_v45  ;;  %1314 = vmatpush.bf16.msra.mxu0 %v2026_v46 }
  0xde   :  { %1288 = vmatpush.bf16.msrb.mxu2 %v2010_v49  ;;  %1301 = vmatpush.bf16.msrb.mxu3 %v2018_v50  ;;  %v257_v49 = vperm.slane %v249_v15, 6 }
  0xe1   :  { %1276 = vmatpush.bf16.msrb.mxu1 %v2001_v51  ;;  %1315 = vmatpush.bf16.msra.mxu0 %v2025_v52 }
  0xe2   :  { %1289 = vmatpush.bf16.msrb.mxu2 %v2009_v55  ;;  %1302 = vmatpush.bf16.msrb.mxu3 %v2017_v56 }
  0xe5   :  { %1277 = vmatpush.bf16.msrb.mxu1 %v2000_v53  ;;  %1316 = vmatpush.bf16.msra.mxu0 %v2024_v54 }
  0xe6   :  { %1290 = vmatpush.bf16.msrb.mxu2 %v2008_v59  ;;  %1303 = vmatpush.bf16.msrb.mxu3 %v2016_v60 }
  0xe9   :  { %1278 = vmatpush.bf16.msrb.mxu1 %v1999_v57  ;;  %1317 = vmatpush.bf16.msra.mxu0 %v2023_v58 }
  0xea   :  { %1291 = vmatpush.bf16.msrb.mxu2 %v2007_v63  ;;  %1304 = vmatpush.bf16.msrb.mxu3 %v2015_v0 }
  0xed   :  { %1279 = vmatpush.bf16.msrb.mxu1 %v1998_v61  ;;  %1318 = vmatpush.bf16.msra.mxu0 %v2022_v62 }
  0xee   :  { %1292 = vmatpush.bf16.msrb.mxu2 %v2006_v3  ;;  %1305 = vmatpush.bf16.msrb.mxu3 %v2014_v4  ;;  %v2038_v3 = vld [vmem:[%s2277_s6] ss:$0 sm:$0xff] }
  0xf1   :  { %1280 = vmatpush.bf16.msrb.mxu1 %v1997_v1  ;;  %1319 = vmatpush.bf16.msra.mxu0 %v2021_v2 }
  0xf2   :  { %1293 = vmatpush.bf16.msrb.mxu2 %v2005_v7  ;;  %1306 = vmatpush.bf16.msrb.mxu3 %v2013_v8 }
  0xf5   :  { %1281 = vmatpush.bf16.msrb.mxu1 %v1996_v5  ;;  %1320 = vmatpush.bf16.msra.mxu0 %v2020_v6 }
  0xf6   :  { %1294 = vmatpush.bf16.msrb.mxu2 %v2004_v11  ;;  %1307 = vmatpush.bf16.msrb.mxu3 %v2012_v12 }
  0xf9   :  { %1282 = vmatpush.bf16.msrb.mxu1 %v1995_v9  ;;  %1321 = vmatpush.bf16.msra.mxu0 %v2019_v10 }
  0xfa   :  { %1295 = vmatpush.bf16.msrb.mxu2 %v2003_v13  ;;  %1308 = vmatpush.bf16.msrb.mxu3 %v2011_v14 }
 0x138   :  { %v596_v18 = vpop.f32.mrf.mxu1 }
 0x139   :  { %v597_v19 = vadd.f32 %v596_v18, %v251_v16  ;;  %v635_v20 = vpop.f32.mrf.mxu0 }
 0x13a   :  { %v636_v21 = vadd.f32 %v635_v20, %v254_v17 }
 0x13b   :  { %v691_v22 = vmax.f32 %v597_v19, 0.0 }
 0x13c   :  { %v694_v24 = vmax.f32 %v636_v21, 0.0 }
 0x13d   :  { %v699_v26 = vpack.c.bf16 %v691_v22, %v691_v22 }
 0x13e   :  { %v702_v27 = vpack.c.bf16 %v694_v24, %v694_v24  ;;  %v609_v28 = vpop.f32.mrf.mxu2 }
 0x13f   :  { %v610_v29 = vadd.f32 %v609_v28, %v252_v23  ;;  %v622_v30 = vpop.f32.mrf.mxu3  ;;  %1231 = vmatmul.bf16.vlgmr.msra.gmra.mxu1 %v699_v26 }
 0x140   :  { %v623_v31 = vadd.f32 %v622_v30, %v253_v25  ;;  %1270 = vmatmul.bf16.vlgmr.msrb.gmra.mxu0 %v702_v27  ;;  %v598_v32 = vpop.f32.mrf.mxu1 }
 0x141   :  { %v692_v33 = vmax.f32 %v610_v29, 0.0  ;;  %v637_v34 = vpop.f32.mrf.mxu0 }
 0x142   :  { %v693_v35 = vmax.f32 %v623_v31, 0.0 }
 0x143   :  { %v700_v36 = vpack.c.bf16 %v692_v33, %v692_v33 }
 0x144   :  { %v701_v37 = vpack.c.bf16 %v693_v35, %v693_v35 }
 0x145   :  { %1244 = vmatmul.bf16.vlgmr.msra.gmra.mxu2 %v700_v36 }
 0x146   :  { %1257 = vmatmul.bf16.vlgmr.msra.gmra.mxu3 %v701_v37  ;;  %v611_v39 = vpop.f32.mrf.mxu2 }
 0x147   :  { %v624_v41 = vpop.f32.mrf.mxu3 }
 0x148   :  { %v648_v42 = vpop.f32.mrf.mxu1 }
 0x149   :  { %v649_v43 = vadd.f32 %v648_v42, %v255_v38  ;;  %v687_v44 = vpop.f32.mrf.mxu0 }
 0x14a   :  { %v688_v45 = vadd.f32 %v687_v44, %v258_v40 }
 0x14b   :  { %v695_v46 = vmax.f32 %v649_v43, 0.0 }
 0x14c   :  { %v698_v48 = vmax.f32 %v688_v45, 0.0 }
 0x14d   :  { %v703_v50 = vpack.c.bf16 %v695_v46, %v695_v46 }
 0x14e   :  { %v706_v51 = vpack.c.bf16 %v698_v48, %v698_v48  ;;  %v661_v52 = vpop.f32.mrf.mxu2 }
 0x14f   :  { %v662_v53 = vadd.f32 %v661_v52, %v256_v47  ;;  %v674_v54 = vpop.f32.mrf.mxu3  ;;  %1283 = vmatmul.bf16.vlgmr.msrb.gmra.mxu1 %v703_v50 }
 0x150   :  { %v675_v55 = vadd.f32 %v674_v54, %v257_v49  ;;  %1322 = vmatmul.bf16.vlgmr.msra.gmra.mxu0 %v706_v51  ;;  %v650_v56 = vpop.f32.mrf.mxu1 }
 0x151   :  { %v696_v57 = vmax.f32 %v662_v53, 0.0  ;;  %v689_v58 = vpop.f32.mrf.mxu0 }
 0x152   :  { %v697_v59 = vmax.f32 %v675_v55, 0.0 }
 0x153   :  { %v704_v60 = vpack.c.bf16 %v696_v57, %v696_v57 }
 0x154   :  { %v705_v61 = vpack.c.bf16 %v697_v59, %v697_v59 }
 0x155   :  { %1296 = vmatmul.bf16.vlgmr.msrb.gmra.mxu2 %v704_v60 }
 0x156   :  { %1309 = vmatmul.bf16.vlgmr.msrb.gmra.mxu3 %v705_v61  ;;  %v663_v62 = vpop.f32.mrf.mxu2 }
 0x157   :  { %v676_v63 = vpop.f32.mrf.mxu3 }
 0x1bc   :  { %v1232_v0 = vpop.f32.mrf.mxu1 }
 0x1bd   :  { %v1271_v1 = vpop.f32.mrf.mxu0  ;;  %v1233_v6 = vadd.f32 %v2038_v3, %v1232_v0 }
 0x1c4   :  { %v1234_v2 = vpop.f32.mrf.mxu1 }
 0x1c5   :  { %v1273_v4 = vpop.f32.mrf.mxu0 }
 0x1c8   :  { %v1245_v5 = vpop.f32.mrf.mxu2 }
 0x1c9   :  { %v1258_v7 = vpop.f32.mrf.mxu3  ;;  %v1246_v8 = vadd.f32 %v1245_v5, %v1233_v6 }
 0x1cb   :  { %v1259_v11 = vadd.f32 %v1258_v7, %v1246_v8 }
 0x1cc   :  { %v1284_v9 = vpop.f32.mrf.mxu1 }
 0x1cd   :  { %v1323_v10 = vpop.f32.mrf.mxu0  ;;  %v1272_v14 = vadd.f32 %v1271_v1, %v1259_v11 }
 0x1cf   :  { %v1285_v17 = vadd.f32 %v1284_v9, %v1272_v14 }
 0x1d0   :  { %v1247_v12 = vpop.f32.mrf.mxu2 }
 0x1d1   :  { %v1260_v13 = vpop.f32.mrf.mxu3 }
 0x1d4   :  { %v1286_v15 = vpop.f32.mrf.mxu1 }
 0x1d5   :  { %v1325_v16 = vpop.f32.mrf.mxu0 }
 0x1d8   :  { %v1297_v18 = vpop.f32.mrf.mxu2 }
 0x1d9   :  { %v1298_v19 = vadd.f32 %v1297_v18, %v1285_v17  ;;  %v1310_v20 = vpop.f32.mrf.mxu3 }
 0x1db   :  { %v1311_v21 = vadd.f32 %v1310_v20, %v1298_v19 }
 0x1dd   :  { %v1324_v22 = vadd.f32 %v1323_v10, %v1311_v21 }
 0x1df   :  { %1327 = vst [vmem:[#allocation11] sm:$0xff] %v1324_v22 }
 0x1e0   :  { %v1299_v23 = vpop.f32.mrf.mxu2  ;;  %1338 = dma.vmem_to_hbm [thread:$0]  %s1334_s29, 128, %s1336_s8, [#allocation4]  }
 0x1e1   :  { %v1312_v24 = vpop.f32.mrf.mxu3 }
 0x1e2   :  { %2189 = dma.done.wait [#allocation4], 128  }
 0x1e3   :  { %2190 = vsyncadd [#allocation4], 4294967168 }
 0x1e4   :  { %1343 = vsyncpa [#allocation3], 1 }
 0x1e5   :  { %1344 = vsyncpa [#allocation6], 1 }
 0x1e6   :  { %1345 = vsyncpa [#allocation9], 1 }
 0x1e7   :  { %1346 = vsyncpa [#allocation4], 1 }

</bundles_post_ra>
